<compile_context>
chip_gen: v7x
topology: tpu7x:2x2x1
jax: 0.10.0
libtpu: 0.0.40
codegen_flags: <defaults>
</compile_context>

<pallas_src>
import functools

import jax
import jax.numpy as jnp
from jax.experimental import pallas as pl
from jax.experimental.pallas import tpu as pltpu


# --------------------------------------------------------------------------------------
# Kernel 1: tiled linear head + online-logsumexp cross entropy (per-row loss + logits)
# --------------------------------------------------------------------------------------
def softmax_ce_kernel(c_valid, tn, x_ref, w_ref, b_ref, lab_ref,
                      logits_ref, rowloss_ref, m_sc, l_sc, t_sc):
    j = pl.program_id(1)

    @pl.when(j == 0)
    def _():
        m_sc[...] = jnp.full(m_sc.shape, -jnp.inf, dtype=jnp.float32)
        l_sc[...] = jnp.zeros_like(l_sc)
        t_sc[...] = jnp.zeros_like(t_sc)

    # MXU matmul for this (row, class) tile; bias broadcast over sublanes.
    logits = jnp.dot(x_ref[...], w_ref[...],
                     preferred_element_type=jnp.float32) + b_ref[...]
    logits_ref[...] = logits                      # lane-dense store (tn is a 128-multiple)

    # Global class index of each column in this tile; mask padded classes out of the lse.
    col = jax.lax.broadcasted_iota(jnp.int32, logits.shape, 1) + j * tn
    masked = jnp.where(col < c_valid, logits, jnp.float32(-1e30))

    # Online (running max / rescaled sum-exp) logsumexp across class tiles.
    m_prev = m_sc[...]
    m_new = jnp.maximum(m_prev, jnp.max(masked, axis=-1, keepdims=True))
    l_sc[...] = (jnp.exp(m_prev - m_new) * l_sc[...]
                 + jnp.sum(jnp.exp(masked - m_new), axis=-1, keepdims=True))
    m_sc[...] = m_new

    # Target logit via integer labels (no one-hot input): labels are always < c_valid,
    # so padded columns can never match.
    lab = lab_ref[...]                            # (tm, 1) int32
    t_sc[...] += jnp.sum(jnp.where(col == lab, logits, 0.0),
                         axis=-1, keepdims=True)

    @pl.when(j == pl.num_programs(1) - 1)
    def _():
        rowloss_ref[...] = m_sc[...] + jnp.log(l_sc[...]) - t_sc[...]


# --------------------------------------------------------------------------------------
# Kernel 2: AngleProto prototypical loss (per-row CE against the anchor prototypes)
# --------------------------------------------------------------------------------------
def angleproto_kernel(nper, x_ref, wb_ref, rowloss_ref):
    N, D = x_ref.shape
    B = N // nper

    pos = x_ref[pl.ds(0, B), :]                   # out_positive = x_view[:, 0, :]
    if nper == 2:
        anc = x_ref[pl.ds(B, B), :]
    else:
        # Sum of the remaining views; the 1/(nper-1) mean scale cancels in the
        # cosine normalization below.
        anc = jnp.sum(x_ref[pl.ds(B, (nper - 1) * B), :].reshape(nper - 1, B, D),
                      axis=0)

    eps2 = jnp.float32(1e-16)                     # (1e-8)^2: rsqrt(max(ss, eps^2)) == 1/max(||.||, eps)
    pos_n = pos * jax.lax.rsqrt(jnp.maximum(jnp.sum(pos * pos, axis=-1, keepdims=True), eps2))
    anc_n = anc * jax.lax.rsqrt(jnp.maximum(jnp.sum(anc * anc, axis=-1, keepdims=True), eps2))

    ap_w = wb_ref[0, 0]
    ap_b = wb_ref[0, 1]
    # NOTE: the reference calls torch.clamp(self.w, 1e-6) but discards the result (no-op),
    # so we intentionally do NOT clamp w here.

    # cosine-similarity matrix (B, B): cos[i, j] = <pos_n[i], anc_n[j]>
    cos = jax.lax.dot_general(pos_n, anc_n, (((1,), (1,)), ((), ())),
                              preferred_element_type=jnp.float32)
    scaled = cos * ap_w + ap_b

    # CE with labels = arange(B): per-row loss = logsumexp(scaled[j]) - scaled[j, j].
    # The diagonal is just the row-wise dot of the normalized vectors (no iota masks).
    m = jnp.max(scaled, axis=-1, keepdims=True)
    lse = m + jnp.log(jnp.sum(jnp.exp(scaled - m), axis=-1, keepdims=True))
    diag = jnp.sum(pos_n * anc_n, axis=-1, keepdims=True) * ap_w + ap_b
    rowloss_ref[...] = lse - diag


# --------------------------------------------------------------------------------------
# Wrapper
# --------------------------------------------------------------------------------------
def _round_up(n, m):
    return ((n + m - 1) // m) * m


def _pick_row_tile(n):
    for t in (256, 128, 64, 32, 16, 8):
        if n % t == 0:
            return t
    return n  # fall back to the full dimension (allowed when not 8-divisible)


def softmaxproto_forward(x, w_cls, b_cls, label, ap_w, ap_b, nper):
    N, D = x.shape
    C = w_cls.shape[1]
    B = N // nper

    # Pad feature / class dims to lane-dense multiples of 128 (zeros don't change the
    # matmul, the norms, or the dot products; padded classes are masked in-kernel).
    Dp = _round_up(D, 128)
    Cp = _round_up(C, 128)
    x_p = jnp.pad(x, ((0, 0), (0, Dp - D)))
    w_p = jnp.pad(w_cls, ((0, Dp - D), (0, Cp - C)))
    b_p = jnp.pad(jnp.reshape(b_cls, (1, C)), ((0, 0), (0, Cp - C)))
    lab2 = label.astype(jnp.int32).reshape(N, 1)
    wb = jnp.array([[ap_w, ap_b]], dtype=jnp.float32)

    # Tile sizes: MXU-aligned (256 on v6e/v7x; 128-multiples still fine on v5e), capped
    # so double-buffered tiles fit v7x's 64 MiB VMEM with full D resident.
    tm = _pick_row_tile(N)
    tn = 256 if Cp % 256 == 0 else 128
    grid = (N // tm, Cp // tn)

    ce_kernel = functools.partial(softmax_ce_kernel, C, tn)
    logits_p, ce_rows = pl.pallas_call(
        ce_kernel,
        out_shape=(jax.ShapeDtypeStruct((N, Cp), jnp.float32),
                   jax.ShapeDtypeStruct((N, 1), jnp.float32)),
        grid_spec=pltpu.PrefetchScalarGridSpec(
            num_scalar_prefetch=0,
            grid=grid,
            in_specs=[
                pl.BlockSpec((tm, Dp), lambda i, j: (i, 0)),   # x tile
                pl.BlockSpec((Dp, tn), lambda i, j: (0, j)),   # classifier weight tile
                pl.BlockSpec((1, tn), lambda i, j: (0, j)),    # classifier bias tile
                pl.BlockSpec((tm, 1), lambda i, j: (i, 0)),    # int32 labels (no one-hot)
            ],
            out_specs=(
                pl.BlockSpec((tm, tn), lambda i, j: (i, j)),   # logits tile (lane-dense)
                pl.BlockSpec((tm, 1), lambda i, j: (i, 0)),    # per-row CE (written on last j)
            ),
            scratch_shapes=[pltpu.VMEM((tm, 1), jnp.float32)] * 3,  # m, l, target
        ),
        compiler_params=pltpu.CompilerParams(
            dimension_semantics=("parallel", "arbitrary")),
        cost_estimate=pl.CostEstimate(
            flops=2 * N * Dp * Cp,
            transcendentals=N * Cp,
            bytes_accessed=4 * (N * Dp + Dp * Cp + N * Cp + 2 * N)),
    )(x_p, w_p, b_p, lab2)

    nlossS = jnp.mean(ce_rows)

    ap_rows = pl.pallas_call(
        functools.partial(angleproto_kernel, nper),
        out_shape=jax.ShapeDtypeStruct((B, 1), jnp.float32),
        in_specs=[
            pl.BlockSpec(memory_space=pltpu.MemorySpace.VMEM),   # x (padded D; zeros are inert)
            pl.BlockSpec(memory_space=pltpu.MemorySpace.SMEM),   # [w, b] AngleProto scalars
        ],
        out_specs=pl.BlockSpec(memory_space=pltpu.MemorySpace.VMEM),
    )(x_p, wb)

    nlossP = jnp.mean(ap_rows)

    logits = logits_p[:, :C]
    return nlossS + nlossP, logits


# --------------------------------------------------------------------------------------
# Pure-JAX reference mirroring the PyTorch module
# --------------------------------------------------------------------------------------
def ref_forward(x, w_cls, b_cls, label, ap_w, ap_b, nper):
    logits = x @ w_cls + b_cls
    logz = jax.nn.logsumexp(logits, axis=-1)
    nlossS = jnp.mean(logz - logits[jnp.arange(x.shape[0]), label])

    B = x.shape[0] // nper
    xr = jnp.transpose(x.reshape(nper, B, -1), (1, 0, 2))
    pos = xr[:, 0, :]
    anc = jnp.mean(xr[:, 1:, :], axis=1)
    pn = pos / jnp.maximum(jnp.linalg.norm(pos, axis=-1, keepdims=True), 1e-8)
    an = anc / jnp.maximum(jnp.linalg.norm(anc, axis=-1, keepdims=True), 1e-8)
    cosm = pn @ an.T * ap_w + ap_b
    logz2 = jax.nn.logsumexp(cosm, axis=-1)
    nlossP = jnp.mean(logz2 - jnp.diag(cosm))
    return nlossS + nlossP, logits


if __name__ == "__main__":
    key = jax.random.PRNGKey(0)
    nper = 2       # nPerSpeaker
    B = 8          # speakers per batch (stepsize in Angleproto)
    D = 32         # embedding dim
    C = 16         # number of classes in the softmax head
    N = nper * B

    k1, k2, k3, k4 = jax.random.split(key, 4)
    x = jax.random.normal(k1, (N, D), jnp.float32)
    w_cls = 0.1 * jax.random.normal(k2, (D, C), jnp.float32)   # deterministic synthetic params
    b_cls = 0.01 * jax.random.normal(k3, (C,), jnp.float32)
    label = jax.random.randint(k4, (N,), 0, C)
    ap_w, ap_b = 10.0, -5.0                                    # Angleproto init_w / init_b

    fwd = jax.jit(softmaxproto_forward, static_argnums=6)
    loss, logits = fwd(x, w_cls, b_cls, label, ap_w, ap_b, nper)
    jax.block_until_ready((loss, logits))

    ref_loss, ref_logits = ref_forward(x, w_cls, b_cls, label, ap_w, ap_b, nper)
    assert jnp.allclose(loss, ref_loss, atol=1e-4, rtol=1e-4)
    assert jnp.allclose(logits, ref_logits, atol=1e-4, rtol=1e-4)

    print("KERNEL_OK")
</pallas_src>

<mosaic_0001>
module attributes {stable_mosaic.version = 11 : i64} {
  func.func @angleproto_kernel(%arg0: memref<16x128xf32, #tpu.memory_space<vmem>>, %arg1: memref<1x2xf32, #tpu.memory_space<smem>>, %arg2: memref<8x1xf32, #tpu.memory_space<vmem>>) attributes {dimension_semantics = [], scalar_prefetch = 0 : i64, scratch_operands = 0 : i64, tpu.core_type = #tpu.core_type<tc>} {
    %c0 = arith.constant 0 : index
    %c0_0 = arith.constant 0 : index
    %0 = vector.load %arg0[%c0, %c0_0] : memref<16x128xf32, #tpu.memory_space<vmem>>, vector<8x128xf32>
    %c8 = arith.constant 8 : index
    %c0_1 = arith.constant 0 : index
    %1 = vector.load %arg0[%c8, %c0_1] : memref<16x128xf32, #tpu.memory_space<vmem>>, vector<8x128xf32>
    %2 = arith.mulf %0, %0 : vector<8x128xf32>
    %cst = arith.constant dense<0.000000e+00> : vector<8xf32>
    %3 = vector.multi_reduction <add>, %2, %cst [1] : vector<8x128xf32> to vector<8xf32>
    %4 = vector.shape_cast %3 : vector<8xf32> to vector<8x1xf32>
    %cst_2 = arith.constant 1.000000e-16 : f32
    %5 = vector.broadcast %cst_2 : f32 to vector<8x1xf32>
    %6 = arith.maximumf %4, %5 : vector<8x1xf32>
    %7 = math.rsqrt %6 : vector<8x1xf32>
    %8 = vector.broadcast %7 : vector<8x1xf32> to vector<8x128xf32>
    %9 = arith.mulf %0, %8 : vector<8x128xf32>
    %10 = arith.mulf %1, %1 : vector<8x128xf32>
    %cst_3 = arith.constant dense<0.000000e+00> : vector<8xf32>
    %11 = vector.multi_reduction <add>, %10, %cst_3 [1] : vector<8x128xf32> to vector<8xf32>
    %12 = vector.shape_cast %11 : vector<8xf32> to vector<8x1xf32>
    %cst_4 = arith.constant 1.000000e-16 : f32
    %13 = vector.broadcast %cst_4 : f32 to vector<8x1xf32>
    %14 = arith.maximumf %12, %13 : vector<8x1xf32>
    %15 = math.rsqrt %14 : vector<8x1xf32>
    %16 = vector.broadcast %15 : vector<8x1xf32> to vector<8x128xf32>
    %17 = arith.mulf %1, %16 : vector<8x128xf32>
    %c0_5 = arith.constant 0 : index
    %c0_6 = arith.constant 0 : index
    %18 = memref.load %arg1[%c0_5, %c0_6] : memref<1x2xf32, #tpu.memory_space<smem>>
    %c0_7 = arith.constant 0 : index
    %c1 = arith.constant 1 : index
    %19 = memref.load %arg1[%c0_7, %c1] : memref<1x2xf32, #tpu.memory_space<smem>>
    %cst_8 = arith.constant dense<0.000000e+00> : vector<8x8xf32>
    %20 = tpu.matmul %9, %17, %cst_8 {dimension_numbers = #tpu.dot_dimension_numbers<[1], [1], [0], [0], [0, 0, 1, 0], [], []>} : vector<8x128xf32>, vector<8x128xf32>, vector<8x8xf32> -> vector<8x8xf32>
    %21 = vector.broadcast %18 : f32 to vector<8x8xf32>
    %22 = arith.mulf %20, %21 : vector<8x8xf32>
    %23 = vector.broadcast %19 : f32 to vector<8x8xf32>
    %24 = arith.addf %22, %23 : vector<8x8xf32>
    %cst_9 = arith.constant dense<0xFF800000> : vector<8xf32>
    %25 = vector.multi_reduction <maximumf>, %24, %cst_9 [1] : vector<8x8xf32> to vector<8xf32>
    %26 = vector.shape_cast %25 : vector<8xf32> to vector<8x1xf32>
    %27 = vector.broadcast %26 : vector<8x1xf32> to vector<8x8xf32>
    %28 = arith.subf %24, %27 : vector<8x8xf32>
    %29 = math.exp %28 : vector<8x8xf32>
    %cst_10 = arith.constant dense<0.000000e+00> : vector<8xf32>
    %30 = vector.multi_reduction <add>, %29, %cst_10 [1] : vector<8x8xf32> to vector<8xf32>
    %31 = vector.shape_cast %30 : vector<8xf32> to vector<8x1xf32>
    %32 = math.log %31 : vector<8x1xf32>
    %33 = arith.addf %26, %32 : vector<8x1xf32>
    %34 = arith.mulf %9, %17 : vector<8x128xf32>
    %cst_11 = arith.constant dense<0.000000e+00> : vector<8xf32>
    %35 = vector.multi_reduction <add>, %34, %cst_11 [1] : vector<8x128xf32> to vector<8xf32>
    %36 = vector.shape_cast %35 : vector<8xf32> to vector<8x1xf32>
    %37 = vector.broadcast %18 : f32 to vector<8x1xf32>
    %38 = arith.mulf %36, %37 : vector<8x1xf32>
    %39 = vector.broadcast %19 : f32 to vector<8x1xf32>
    %40 = arith.addf %38, %39 : vector<8x1xf32>
    %41 = arith.subf %33, %40 : vector<8x1xf32>
    %c0_12 = arith.constant 0 : index
    %c0_13 = arith.constant 0 : index
    %42 = vector.load %arg2[%c0_12, %c0_13] : memref<8x1xf32, #tpu.memory_space<vmem>>, vector<8x1xf32>
    tpu.vector_store %arg2[%c0_12, %c0_13], %41 {strides = array<i32>} : memref<8x1xf32, #tpu.memory_space<vmem>>, vector<8x1xf32>,
    return
  }
}

module attributes {stable_mosaic.version = 11 : i64} {
  func.func @softmax_ce_kernel(%arg0: i32, %arg1: i32, %arg2: memref<16x128xf32, #tpu.memory_space<vmem>>, %arg3: memref<128x128xf32, #tpu.memory_space<vmem>>, %arg4: memref<1x128xf32, #tpu.memory_space<vmem>>, %arg5: memref<16x1xi32, #tpu.memory_space<vmem>>, %arg6: memref<16x128xf32, #tpu.memory_space<vmem>>, %arg7: memref<16x1xf32, #tpu.memory_space<vmem>>, %arg8: memref<16x1xf32, #tpu.memory_space<vmem>>, %arg9: memref<16x1xf32, #tpu.memory_space<vmem>>, %arg10: memref<16x1xf32, #tpu.memory_space<vmem>>) attributes {dimension_semantics = [#tpu.dimension_semantics<parallel>, #tpu.dimension_semantics<arbitrary>], iteration_bounds = array<i64: 1, 1>, scalar_prefetch = 0 : i64, scratch_operands = 3 : i64, tpu.core_type = #tpu.core_type<tc>, window_params = [{transform_indices = @transform_0, window_bounds = array<i64: 16, 128>}, {transform_indices = @transform_1, window_bounds = array<i64: 128, 128>}, {transform_indices = @transform_2, window_bounds = array<i64: 1, 128>}, {transform_indices = @transform_3, window_bounds = array<i64: 16, 1>}, {transform_indices = @transform_4, window_bounds = array<i64: 16, 128>}, {transform_indices = @transform_5, window_bounds = array<i64: 16, 1>}]} {
    %c0_i32 = arith.constant 0 : i32
    %0 = arith.cmpi eq, %arg1, %c0_i32 : i32
    %1 = arith.extui %0 : i1 to i32
    %c0_i32_0 = arith.constant 0 : i32
    %2 = arith.cmpi ne, %1, %c0_i32_0 : i32
    scf.if %2 {
      %cst_29 = arith.constant 0xFF800000 : f32
      %47 = vector.broadcast %cst_29 : f32 to vector<16x1xf32>
      %c0_30 = arith.constant 0 : index
      %c0_31 = arith.constant 0 : index
      %48 = vector.load %arg8[%c0_30, %c0_31] : memref<16x1xf32, #tpu.memory_space<vmem>>, vector<16x1xf32>
      tpu.vector_store %arg8[%c0_30, %c0_31], %47 {strides = array<i32>} : memref<16x1xf32, #tpu.memory_space<vmem>>, vector<16x1xf32>,
      %cst_32 = arith.constant 0.000000e+00 : f32
      %49 = vector.broadcast %cst_32 : f32 to vector<16x1xf32>
      %c0_33 = arith.constant 0 : index
      %c0_34 = arith.constant 0 : index
      %50 = vector.load %arg9[%c0_33, %c0_34] : memref<16x1xf32, #tpu.memory_space<vmem>>, vector<16x1xf32>
      tpu.vector_store %arg9[%c0_33, %c0_34], %49 {strides = array<i32>} : memref<16x1xf32, #tpu.memory_space<vmem>>, vector<16x1xf32>,
      %cst_35 = arith.constant 0.000000e+00 : f32
      %51 = vector.broadcast %cst_35 : f32 to vector<16x1xf32>
      %c0_36 = arith.constant 0 : index
      %c0_37 = arith.constant 0 : index
      %52 = vector.load %arg10[%c0_36, %c0_37] : memref<16x1xf32, #tpu.memory_space<vmem>>, vector<16x1xf32>
      tpu.vector_store %arg10[%c0_36, %c0_37], %51 {strides = array<i32>} : memref<16x1xf32, #tpu.memory_space<vmem>>, vector<16x1xf32>,
    } else {
    }
    %c0 = arith.constant 0 : index
    %c0_1 = arith.constant 0 : index
    %3 = vector.load %arg2[%c0, %c0_1] : memref<16x128xf32, #tpu.memory_space<vmem>>, vector<16x128xf32>
    %c0_2 = arith.constant 0 : index
    %c0_3 = arith.constant 0 : index
    %4 = vector.load %arg3[%c0_2, %c0_3] : memref<128x128xf32, #tpu.memory_space<vmem>>, vector<128x128xf32>
    %cst = arith.constant dense<0.000000e+00> : vector<16x128xf32>
    %5 = tpu.matmul %3, %4, %cst {dimension_numbers = #tpu.dot_dimension_numbers<[1], [0], [0], [1], [0, 0, 1, 1], [], []>} : vector<16x128xf32>, vector<128x128xf32>, vector<16x128xf32> -> vector<16x128xf32>
    %c0_4 = arith.constant 0 : index
    %c0_5 = arith.constant 0 : index
    %6 = vector.load %arg4[%c0_4, %c0_5] : memref<1x128xf32, #tpu.memory_space<vmem>>, vector<1x128xf32>
    %7 = vector.broadcast %6 : vector<1x128xf32> to vector<16x128xf32>
    %8 = arith.addf %5, %7 : vector<16x128xf32>
    %c0_6 = arith.constant 0 : index
    %c0_7 = arith.constant 0 : index
    %9 = vector.load %arg6[%c0_6, %c0_7] : memref<16x128xf32, #tpu.memory_space<vmem>>, vector<16x128xf32>
    tpu.vector_store %arg6[%c0_6, %c0_7], %8 {strides = array<i32>} : memref<16x128xf32, #tpu.memory_space<vmem>>, vector<16x128xf32>,
    %10 = tpu.iota {dimensions = array<i32: 1>} : vector<16x128xi32>
    %c128_i32 = arith.constant 128 : i32
    %11 = arith.muli %arg1, %c128_i32 : i32
    %12 = vector.broadcast %11 : i32 to vector<16x128xi32>
    %13 = arith.addi %10, %12 : vector<16x128xi32>
    %c16_i32 = arith.constant 16 : i32
    %14 = vector.broadcast %c16_i32 : i32 to vector<16x128xi32>
    %15 = arith.cmpi slt, %13, %14 : vector<16x128xi32>
    %cst_8 = arith.constant -1.000000e+30 : f32
    %16 = vector.broadcast %cst_8 : f32 to vector<16x128xf32>
    %17 = arith.select %15, %8, %16 : vector<16x128xi1>, vector<16x128xf32>
    %c0_9 = arith.constant 0 : index
    %c0_10 = arith.constant 0 : index
    %18 = vector.load %arg8[%c0_9, %c0_10] : memref<16x1xf32, #tpu.memory_space<vmem>>, vector<16x1xf32>
    %cst_11 = arith.constant dense<0xFF800000> : vector<16xf32>
    %19 = vector.multi_reduction <maximumf>, %17, %cst_11 [1] : vector<16x128xf32> to vector<16xf32>
    %20 = vector.shape_cast %19 : vector<16xf32> to vector<16x1xf32>
    %21 = arith.maximumf %18, %20 : vector<16x1xf32>
    %22 = arith.subf %18, %21 : vector<16x1xf32>
    %23 = math.exp %22 : vector<16x1xf32>
    %c0_12 = arith.constant 0 : index
    %c0_13 = arith.constant 0 : index
    %24 = vector.load %arg9[%c0_12, %c0_13] : memref<16x1xf32, #tpu.memory_space<vmem>>, vector<16x1xf32>
    %25 = arith.mulf %23, %24 : vector<16x1xf32>
    %26 = vector.broadcast %21 : vector<16x1xf32> to vector<16x128xf32>
    %27 = arith.subf %17, %26 : vector<16x128xf32>
    %28 = math.exp %27 : vector<16x128xf32>
    %cst_14 = arith.constant dense<0.000000e+00> : vector<16xf32>
    %29 = vector.multi_reduction <add>, %28, %cst_14 [1] : vector<16x128xf32> to vector<16xf32>
    %30 = vector.shape_cast %29 : vector<16xf32> to vector<16x1xf32>
    %31 = arith.addf %25, %30 : vector<16x1xf32>
    %c0_15 = arith.constant 0 : index
    %c0_16 = arith.constant 0 : index
    %32 = vector.load %arg9[%c0_15, %c0_16] : memref<16x1xf32, #tpu.memory_space<vmem>>, vector<16x1xf32>
    tpu.vector_store %arg9[%c0_15, %c0_16], %31 {strides = array<i32>} : memref<16x1xf32, #tpu.memory_space<vmem>>, vector<16x1xf32>,
    %c0_17 = arith.constant 0 : index
    %c0_18 = arith.constant 0 : index
    %33 = vector.load %arg8[%c0_17, %c0_18] : memref<16x1xf32, #tpu.memory_space<vmem>>, vector<16x1xf32>
    tpu.vector_store %arg8[%c0_17, %c0_18], %21 {strides = array<i32>} : memref<16x1xf32, #tpu.memory_space<vmem>>, vector<16x1xf32>,
    %c0_19 = arith.constant 0 : index
    %c0_20 = arith.constant 0 : index
    %34 = vector.load %arg5[%c0_19, %c0_20] : memref<16x1xi32, #tpu.memory_space<vmem>>, vector<16x1xi32>
    %c0_21 = arith.constant 0 : index
    %c0_22 = arith.constant 0 : index
    %35 = vector.load %arg10[%c0_21, %c0_22] : memref<16x1xf32, #tpu.memory_space<vmem>>, vector<16x1xf32>
    %36 = vector.broadcast %34 : vector<16x1xi32> to vector<16x128xi32>
    %37 = arith.cmpi eq, %13, %36 : vector<16x128xi32>
    %cst_23 = arith.constant 0.000000e+00 : f32
    %38 = vector.broadcast %cst_23 : f32 to vector<16x128xf32>
    %39 = arith.select %37, %8, %38 : vector<16x128xi1>, vector<16x128xf32>
    %cst_24 = arith.constant dense<0.000000e+00> : vector<16xf32>
    %40 = vector.multi_reduction <add>, %39, %cst_24 [1] : vector<16x128xf32> to vector<16xf32>
    %41 = vector.shape_cast %40 : vector<16xf32> to vector<16x1xf32>
    %42 = arith.addf %35, %41 : vector<16x1xf32>
    %c0_25 = arith.constant 0 : index
    %c0_26 = arith.constant 0 : index
    %43 = vector.load %arg10[%c0_25, %c0_26] : memref<16x1xf32, #tpu.memory_space<vmem>>, vector<16x1xf32>
    tpu.vector_store %arg10[%c0_25, %c0_26], %42 {strides = array<i32>} : memref<16x1xf32, #tpu.memory_space<vmem>>, vector<16x1xf32>,
    %c0_i32_27 = arith.constant 0 : i32
    %44 = arith.cmpi eq, %arg1, %c0_i32_27 : i32
    %45 = arith.extui %44 : i1 to i32
    %c0_i32_28 = arith.constant 0 : i32
    %46 = arith.cmpi ne, %45, %c0_i32_28 : i32
    scf.if %46 {
      %c0_29 = arith.constant 0 : index
      %c0_30 = arith.constant 0 : index
      %47 = vector.load %arg8[%c0_29, %c0_30] : memref<16x1xf32, #tpu.memory_space<vmem>>, vector<16x1xf32>
      %c0_31 = arith.constant 0 : index
      %c0_32 = arith.constant 0 : index
      %48 = vector.load %arg9[%c0_31, %c0_32] : memref<16x1xf32, #tpu.memory_space<vmem>>, vector<16x1xf32>
      %49 = math.log %48 : vector<16x1xf32>
      %50 = arith.addf %47, %49 : vector<16x1xf32>
      %c0_33 = arith.constant 0 : index
      %c0_34 = arith.constant 0 : index
      %51 = vector.load %arg10[%c0_33, %c0_34] : memref<16x1xf32, #tpu.memory_space<vmem>>, vector<16x1xf32>
      %52 = arith.subf %50, %51 : vector<16x1xf32>
      %c0_35 = arith.constant 0 : index
      %c0_36 = arith.constant 0 : index
      %53 = vector.load %arg7[%c0_35, %c0_36] : memref<16x1xf32, #tpu.memory_space<vmem>>, vector<16x1xf32>
      tpu.vector_store %arg7[%c0_35, %c0_36], %52 {strides = array<i32>} : memref<16x1xf32, #tpu.memory_space<vmem>>, vector<16x1xf32>,
    } else {
    }
    return
  }
  func.func @transform_0(%arg0: i32, %arg1: i32) -> (i32, i32) {
    %c0_i32 = arith.constant 0 : i32
    %c0_i32_0 = arith.constant 0 : i32
    return %arg0, %c0_i32 : i32, i32
  }
  func.func @transform_1(%arg0: i32, %arg1: i32) -> (i32, i32) {
    %c0_i32 = arith.constant 0 : i32
    %c0_i32_0 = arith.constant 0 : i32
    return %c0_i32, %arg1 : i32, i32
  }
  func.func @transform_2(%arg0: i32, %arg1: i32) -> (i32, i32) {
    %c0_i32 = arith.constant 0 : i32
    %c0_i32_0 = arith.constant 0 : i32
    return %c0_i32, %arg1 : i32, i32
  }
  func.func @transform_3(%arg0: i32, %arg1: i32) -> (i32, i32) {
    %c0_i32 = arith.constant 0 : i32
    %c0_i32_0 = arith.constant 0 : i32
    return %arg0, %c0_i32 : i32, i32
  }
  func.func @transform_4(%arg0: i32, %arg1: i32) -> (i32, i32) {
    %c0_i32 = arith.constant 0 : i32
    return %arg0, %arg1 : i32, i32
  }
  func.func @transform_5(%arg0: i32, %arg1: i32) -> (i32, i32) {
    %c0_i32 = arith.constant 0 : i32
    %c0_i32_0 = arith.constant 0 : i32
    return %arg0, %c0_i32 : i32, i32
  }
}

</mosaic_0001>

<bundles_post_ra>
// kernel: softmaxproto_forward.3
= control target key start
LH: loop header
LB: loop body
LE: loop exit
PB: predicated region body
PF: predicated region fallthrough
CT: control target
= control target key end

     0   :  { %7 = vsyncpa [#allocation3], 0  ;;  %s203_s0 = inlined_call_operand.vmem [shape: f32[16,128], index: 0, kind: input, shape index: {}]   ;;  %s204_s1 = inlined_call_operand.vmem [shape: f32[1,2], index: 1, kind: input, shape index: {}]   ;;  %s205_s2 = inlined_call_operand.vmem [shape: f32[8,1], index: 2, kind: output, shape index: {}]  }
   0x1   :  { %s16_s11 = sshll.u32 %s204_s1, 4  ;;  %s17_s11 = int_to_ptr.vmem [resolvable:$true] %s16_s11 }
   0x2   :  { %s159_s12 = scalar_lea.vmem %s17_s11, 16  ;;  %p164_p1 = scmp.lt.s32.totalorder %s17_s11, %s17_s11 }
   0x3   :  { %p160_p0 = scmp.ne.s32.totalorder %s17_s11, %s159_s12  ;;  %p165_p2 = scmp.lt.s32.totalorder %s159_s12, %s159_s12 }
   0x5   :  { %p166_p3 = por %p165_p2, %p164_p1 }
   0x7   :  { %p167_p4 = pnand %p166_p3, %p160_p0 }
   0x9   :  { %170 = shalt.err (!%p167_p4)
}
   0xa   :  { %s173_s13 = smov [#allocation2]  }
   0xb   :  { %19 = dma.vmem_to_smem %s17_s11, 16, %s173_s13, [#allocation3]  }
   0xc   :  { %171 = dma.done.wait [#allocation3], 16  }
   0xd   :  { %172 = vsyncadd [#allocation3], 4294967280 }
   0xe   :  { %23 = sfence }
   0xf   :  { %v25_v0 = vld [vmem:[%s203_s0 + $0x8] sm:$0xff]  ;;  %v24_v1 = vld [vmem:[%s203_s0] sm:$0xff]  ;;  %v174_v4 = vmov 0.0   ;;  %vm175_vm0 = vmmov 0   ;;  %s38_s0 = sld [smem:[#allocation2]]  ;;  %s140_s1 = sld [smem:[#allocation2 + $0x1]] }
  0x10   :  { %v32_v2 = vmul.f32 %v25_v0, %v25_v0  ;;  %v26_v3 = vmul.f32 %v24_v1, %v24_v1  ;;  %143 = vmatprep.subr.mxu0 %v174_v4  ;;  %145 = vmatprep.mubr.msk.f32.mxu0 %vm175_vm0, %v174_v4  ;;  %vm114_vm1 = vcmask 64512   ;;  %vm133_vm2 = vcmask 7168  }
  0x12   :  { %33 = vadd.xlane.f32.xlu0 %v32_v2 }
  0x15   :  { %v110_v14 = vstv %s38_s0  ;;  %v112_v18 = vstv %s140_s1 }
  0x16   :  { %27 = vadd.xlane.f32.xlu0 %v26_v3 }
  0x9f   :  { %v34_v5 = vpop.xlane.xlu0 %33 }
  0xa0   :  { %v35_v6 = vmax.f32 %v34_v5, 1e-16 }
  0xa2   :  { %151 = vrsqrt.f32 %v35_v6 }
  0xa3   :  { %v28_v7 = vpop.xlane.xlu0 %27 }
  0xa4   :  { %v29_v8 = vmax.f32 %v28_v7, 1e-16 }
  0xa6   :  { %153 = vrsqrt.f32 %v29_v8 }
  0xac   :  { %v152_v9 = vpop.eup %151 }
  0xad   :  { %v37_v10 = vmul.f32 %v152_v9, %v25_v0 }
  0xaf   :  { %144 = vmatpush3.xpose.msra.mxu0 %v37_v10 }
  0xb0   :  { %v154_v11 = vpop.eup %153 }
  0xb1   :  { %v31_v12 = vmul.f32 %v154_v11, %v24_v1 }
  0xb3   :  { %146 = vmatmul.mubr.f32.vlgmr.msra.gmra.mrb[0].mxu0 %v31_v12  ;;  %v127_v13 = vmul.f32 %v37_v10, %v31_v12 }
  0xb5   :  { %128 = vadd.xlane.f32.xlu0 %v127_v13 }
 0x142   :  { %v129_v27 = vpop.xlane.xlu0 %128 }
 0x143   :  { %v130_v28 = vmul.f32 %v129_v27, %v110_v14 }
 0x145   :  { %v131_v31 = vadd.f32 %v130_v28, %v112_v18 }
 0x186   :  { %v106_v15 = vpop.f32.mrb[0].mxu0 }
 0x187   :  { %v111_v16 = vmul.f32 %v110_v14, %v106_v15  ;;  %v147_v17 = vpop.f32.mrb[1].mxu0 }
 0x189   :  { %v113_v19 = vadd.f32 %v112_v18, %v111_v16 }
 0x18b   :  { %v115_v20 = vsel %vm114_vm1, %v113_v19, -inf }
 0x18c   :  { %116 = vmax.xlane.f32.xlu1 %v115_v20 }
 0x219   :  { %v117_v21 = vpop.xlane.xlu1 %116 }
 0x21a   :  { %v118_v22 = vsub.f32 %v113_v19, %v117_v21 }
 0x21c   :  { %v119_v23 = vmul.f32 1.442695, %v118_v22 }
 0x21e   :  { %155 = vpow2.f32 %v119_v23 }
 0x228   :  { %v156_v24 = vpop.eup %155 }
 0x229   :  { %v121_v25 = vsel %vm114_vm1, %v156_v24, 0.0 }
 0x22a   :  { %122 = vadd.xlane.f32.xlu1 %v121_v25 }
 0x2b7   :  { %v123_v26 = vpop.xlane.xlu1 %122 }
 0x2b8   :  { %157 = vlog2.f32 %v123_v26 }
 0x2c2   :  { %v158_v29 = vpop.eup %157 }
 0x2c3   :  { %v125_v30 = vmul.f32 0.6931472, %v158_v29 }
 0x2c5   :  { %v126_v32 = vadd.f32 %v125_v30, %v117_v21 }
 0x2c7   :  { %v132_v33 = vsub.f32 %v126_v32, %v131_v31 }
 0x2c9   :  { %134 = vst.msk [vmem:[%s205_s2] sm:$0xff] %vm133_vm2, %v132_v33 }
 0x2ca   :  { %139 = vsyncpa [#allocation3], 1 }

// kernel: softmaxproto_forward.2
= control target key start
LH: loop header
LB: loop body
LE: loop exit
PB: predicated region body
PF: predicated region fallthrough
CT: control target
= control target key end

     0   :  { %s508_s0 = inlined_call_operand.vmem [shape: f32[16,128], index: 0, kind: input, shape index: {}]   ;;  %s509_s1 = inlined_call_operand.vmem [shape: f32[128,128], index: 1, kind: input, shape index: {}]   ;;  %s510_s2 = inlined_call_operand.vmem [shape: f32[1,128], index: 2, kind: input, shape index: {}]   ;;  %s511_s3 = inlined_call_operand.vmem [shape: s32[16,1], index: 3, kind: input, shape index: {}]   ;;  %s512_s4 = inlined_call_operand.hbm [shape: f32[16,128], index: 4, kind: output, shape index: {0}]   ;;  %s513_s5 = inlined_call_operand.vmem [shape: f32[16,1], index: 5, kind: output, shape index: {1}]  }
   0x1   :  { %v33_v0 = vld [vmem:[%s509_s1] sm:$0xff]  ;;  %v34_v1 = vld [vmem:[%s509_s1 + $0x8] sm:$0xff]  ;;  %v35_v2 = vld [vmem:[%s509_s1 + $0x10] sm:$0xff] }
   0x2   :  { %v301_v3 = vpack.c.bf16 %v34_v1, %v33_v0  ;;  %v36_v4 = vld [vmem:[%s509_s1 + $0x18] sm:$0xff]  ;;  %v37_v6 = vld [vmem:[%s509_s1 + $0x20] sm:$0xff]  ;;  %v38_v7 = vld [vmem:[%s509_s1 + $0x28] sm:$0xff] }
   0x3   :  { %v305_v5 = vpack.c.bf16 %v36_v4, %v35_v2  ;;  %v309_v8 = vpack.c.bf16 %v38_v7, %v37_v6  ;;  %v31_v9 = vld [vmem:[%s508_s0] sm:$0xff]  ;;  %v39_v10 = vld [vmem:[%s509_s1 + $0x30] sm:$0xff]  ;;  %v40_v11 = vld [vmem:[%s509_s1 + $0x38] sm:$0xff] }
   0x4   :  { %302 = vmatprep.subr.bf16.mxu0 %v301_v3  ;;  %298 = vmatprep.mubr.f32.mxu0 %v31_v9 }
   0x5   :  { %304 = vmatpush3.bf16.msra.mxu0 %v301_v3 }
   0x6   :  { %306 = vmatprep.subr.bf16.mxu0 %v305_v5 }
   0x7   :  { %11 = vsyncpa [#allocation6], 0  ;;  %v313_v12 = vpack.c.bf16 %v40_v11, %v39_v10  ;;  %v41_v13 = vld [vmem:[%s509_s1 + $0x40] sm:$0xff]  ;;  %v42_v14 = vld [vmem:[%s509_s1 + $0x48] sm:$0xff]  ;;  %v377_v26 = vmov 0   ;;  %v133_v27 = vlaneseq  ;;  %vm24_vm1 = vcmask 7168  }
   0x8   :  { %v317_v15 = vpack.c.bf16 %v42_v14, %v41_v13  ;;  %v43_v16 = vld [vmem:[%s509_s1 + $0x50] sm:$0xff]  ;;  %v44_v17 = vld [vmem:[%s509_s1 + $0x58] sm:$0xff]  ;;  %v45_v19 = vld [vmem:[%s509_s1 + $0x60] sm:$0xff]  ;;  %340 = vset.pattern.permute.xlu0 %v377_v26  ;;  %339 = vset.pattern.permute.xlu1 %v377_v26  ;;  %v378_v36 = vmov -inf   ;;  %v379_v38 = vmov 0.0  }
   0x9   :  { %308 = vmatpush3.bf16.msra.mxu0 %v305_v5  ;;  %v321_v18 = vpack.c.bf16 %v44_v17, %v43_v16  ;;  %v46_v20 = vld [vmem:[%s509_s1 + $0x68] sm:$0xff]  ;;  %v47_v22 = vld [vmem:[%s509_s1 + $0x70] sm:$0xff]  ;;  %v48_v23 = vld [vmem:[%s509_s1 + $0x78] sm:$0xff]  ;;  %v134_v28 = vand.u32 127, %v133_v27  ;;  %25 = vst.msk [vmem:[#allocation2] sm:$0xff] %vm24_vm1, %v378_v36 }
   0xa   :  { %310 = vmatprep.subr.bf16.mxu0 %v309_v8  ;;  %v325_v21 = vpack.c.bf16 %v46_v20, %v45_v19  ;;  %v329_v24 = vpack.c.bf16 %v48_v23, %v47_v22  ;;  %v32_v25 = vld [vmem:[%s508_s0 + $0x8] sm:$0xff]  ;;  %v247_v29 = vld [vmem:[%s510_s2] ss:$0 sm:$0xff]  ;;  %26 = vst.msk [vmem:[#allocation2 + $0x8] sm:$0xff] %vm24_vm1, %v378_v36  ;;  %29 = vst.msk [vmem:[#allocation4] sm:$0xff] %vm24_vm1, %v379_v38 }
   0xb   :  { %vm138_vm0 = vcmp.lt.s32.totalorder %v134_v28, 16  ;;  %v186_v37 = vld [vmem:[%s511_s3] sm:$0xff]  ;;  %27 = vst.msk [vmem:[#allocation3] sm:$0xff] %vm24_vm1, %v379_v38  ;;  %28 = vst.msk [vmem:[#allocation3 + $0x8] sm:$0xff] %vm24_vm1, %v379_v38  ;;  %v187_v47 = vld [vmem:[%s511_s3 + $0x8] sm:$0xff]  ;;  %s380_s3 = smov [#allocation5]  }
   0xc   :  { %30 = vst.msk [vmem:[#allocation4 + $0x8] sm:$0xff] %vm24_vm1, %v379_v38  ;;  %s232_s7 = sshll.u32 %s380_s3, 4  ;;  %s233_s7 = int_to_ptr.vmem [resolvable:$true] %s232_s7 }
   0xd   :  { %312 = vmatpush3.bf16.msra.mxu0 %v309_v8  ;;  %s353_s8 = scalar_lea.vmem %s233_s7, 256  ;;  %p358_p1 = scmp.lt.s32.totalorder %s233_s7, %s233_s7 }
   0xe   :  { %314 = vmatprep.subr.bf16.mxu0 %v313_v12  ;;  %p354_p0 = scmp.ne.s32.totalorder %s233_s7, %s353_s8  ;;  %p359_p2 = scmp.lt.s32.totalorder %s353_s8, %s353_s8 }
  0x10   :  { %v141_v39 = vld [vmem:[#allocation2] sm:$0xff]  ;;  %p360_p3 = por %p359_p2, %p358_p1 }
  0x11   :  { %316 = vmatpush3.bf16.msra.mxu0 %v313_v12  ;;  %v142_v42 = vld [vmem:[#allocation2 + $0x8] sm:$0xff]  ;;  %v188_v60 = vld [vmem:[#allocation4] sm:$0xff] }
  0x12   :  { %318 = vmatprep.subr.bf16.mxu0 %v317_v15  ;;  %p361_p4 = pnand %p360_p3, %p354_p0 }
  0x15   :  { %320 = vmatpush3.bf16.msra.mxu0 %v317_v15 }
  0x16   :  { %322 = vmatprep.subr.bf16.mxu0 %v321_v18 }
  0x19   :  { %324 = vmatpush3.bf16.msra.mxu0 %v321_v18 }
  0x1a   :  { %326 = vmatprep.subr.bf16.mxu0 %v325_v21 }
  0x1d   :  { %328 = vmatpush3.bf16.msra.mxu0 %v325_v21 }
  0x1e   :  { %330 = vmatprep.subr.bf16.mxu0 %v329_v24 }
  0x21   :  { %332 = vmatpush3.bf16.msra.mxu0 %v329_v24 }
  0x24   :  { %299 = vmatmul.mubr.f32.vlgmr.msra.gmra.mrb[0].mxu0 %v32_v25 }
  0xf7   :  { %v300_v30 = vpop.f32.mrb[0].mxu0 }
  0xf8   :  { %v128_v31 = vadd.f32 %v300_v30, %v247_v29  ;;  %v122_v32 = vpop.f32.mrb[1].mxu0 }
  0xf9   :  { %v123_v33 = vadd.f32 %v247_v29, %v122_v32 }
  0xfa   :  { %132 = vst [vmem:[#allocation5 + $0x8] sm:$0xff] %v128_v31  ;;  %v140_v35 = vsel %vm138_vm0, %v128_v31, -1e+30 }
  0xfb   :  { %131 = vst [vmem:[#allocation5] sm:$0xff] %v123_v33  ;;  %v139_v34 = vsel %vm138_vm0, %v123_v33, -1e+30 }
  0xfc   :  { %143 = vmax.xlane.f32.xlu0 %v139_v34 }
 0x100   :  { %145 = vmax.xlane.f32.xlu0 %v140_v35 }
 0x116   :  { %191 = vperm.xlu0 %340, %v186_v37  }
 0x189   :  { %v144_v40 = vpop.xlane.xlu0 %143 }
 0x18a   :  { %v147_v41 = vmax.f32 %v141_v39, %v144_v40 }
 0x18c   :  { %v149_v43 = vsub.f32 %v141_v39, %v147_v41  ;;  %184 = vst.msk [vmem:[#allocation2] sm:$0xff] %vm24_vm1, %v147_v41  ;;  %161 = vperm.xlu1 %339, %v147_v41  }
 0x18d   :  { %v146_v44 = vpop.xlane.xlu0 %145 }
 0x18e   :  { %v148_v45 = vmax.f32 %v142_v42, %v146_v44 }
 0x190   :  { %v150_v46 = vsub.f32 %v142_v42, %v148_v45  ;;  %185 = vst.msk [vmem:[#allocation2 + $0x8] sm:$0xff] %vm24_vm1, %v148_v45  ;;  %166 = vperm.xlu1 %339, %v148_v45  }
 0x194   :  { %194 = vperm.xlu1 %339, %v187_v47  }
 0x195   :  { %v192_v48 = vpop.permute.xlu0 %191 }
 0x196   :  { %vm196_vm2 = vcmp.eq.s32.totalorder %v134_v28, %v192_v48 }
 0x197   :  { %v198_v49 = vsel %vm196_vm2, %v123_v33, 0.0 }
 0x198   :  { %200 = vadd.xlane.f32.xlu0 %v198_v49 }
 0x20b   :  { %v162_v50 = vpop.permute.xlu1 %161 }
 0x20c   :  { %v169_v51 = vsub.f32 %v139_v34, %v162_v50 }
 0x20e   :  { %v171_v52 = vmul.f32 1.442695, %v169_v51 }
 0x20f   :  { %v167_v53 = vpop.permute.xlu1 %166 }
 0x210   :  { %341 = vpow2.f32 %v171_v52  ;;  %v170_v54 = vsub.f32 %v140_v35, %v167_v53 }
 0x212   :  { %v173_v55 = vmul.f32 1.442695, %v170_v54 }
 0x213   :  { %v195_v57 = vpop.permute.xlu1 %194 }
 0x214   :  { %343 = vpow2.f32 %v173_v55  ;;  %vm197_vm3 = vcmp.eq.s32.totalorder %v134_v28, %v195_v57 }
 0x215   :  { %v199_v59 = vsel %vm197_vm3, %v128_v31, 0.0 }
 0x21a   :  { %v342_v56 = vpop.eup %341 }
 0x21b   :  { %175 = vadd.xlane.f32.xlu1 %v342_v56 }
 0x21e   :  { %v344_v58 = vpop.eup %343 }
 0x21f   :  { %177 = vadd.xlane.f32.xlu1 %v344_v58 }
 0x223   :  { %202 = vadd.xlane.f32.xlu1 %v199_v59 }
 0x225   :  { %v201_v61 = vpop.xlane.xlu0 %200 }
 0x226   :  { %v204_v62 = vadd.f32 %v201_v61, %v188_v60 }
 0x228   :  { %206 = vst.msk [vmem:[#allocation4] sm:$0xff] %vm24_vm1, %v204_v62 }
 0x229   :  { %364 = shalt.err (!%p361_p4)
}
 0x22a   :  { %s365_s11 = scalar_lea.hbm %s512_s4, 256 }
 0x22b   :  { %p366_p5 = scmp.ne.s32.totalorder %s512_s4, %s365_s11  ;;  %p369_p6 = scmp.lt.u32.totalorder %s365_s11, %s512_s4 }
 0x22d   :  { %p371_p7 = pnand %p369_p6, %p366_p5 }
 0x22f   :  { %374 = shalt.err (!%p371_p7)
}
 0x230   :  { %s381_s16 = smov 128   ;;  %s382_s17 = smov 8   ;;  %v151_v63 = vmul.f32 1.442695, %v149_v43  ;;  %v153_v0 = vmul.f32 1.442695, %v150_v46 }
 0x231   :  { %238 = dma.vmem_to_hbm [thread:$0]  %s233_s7, 256, %s512_s4, [#allocation6], %s381_s16, %s381_s16, %s382_s17   ;;  %v155_v2 = vld [vmem:[#allocation3] sm:$0xff]  ;;  %v156_v6 = vld [vmem:[#allocation3 + $0x8] sm:$0xff]  ;;  %v189_v11 = vld [vmem:[#allocation4 + $0x8] sm:$0xff] }
 0x232   :  { %345 = vpow2.f32 %v151_v63  ;;  %v211_v18 = vld [vmem:[#allocation2] sm:$0xff]  ;;  %v212_v24 = vld [vmem:[#allocation2 + $0x8] sm:$0xff] }
 0x233   :  { %347 = vpow2.f32 %v153_v0  ;;  %v221_v21 = vld [vmem:[#allocation4] sm:$0xff] }
 0x23c   :  { %v346_v1 = vpop.eup %345 }
 0x23d   :  { %v157_v3 = vmul.f32 %v346_v1, %v155_v2  ;;  %v348_v4 = vpop.eup %347 }
 0x23e   :  { %v158_v8 = vmul.f32 %v348_v4, %v156_v6 }
 0x2a8   :  { %v176_v5 = vpop.xlane.xlu1 %175 }
 0x2a9   :  { %v179_v7 = vadd.f32 %v176_v5, %v157_v3 }
 0x2ab   :  { %182 = vst.msk [vmem:[#allocation3] sm:$0xff] %vm24_vm1, %v179_v7 }
 0x2ac   :  { %v178_v9 = vpop.xlane.xlu1 %177 }
 0x2ad   :  { %v180_v10 = vadd.f32 %v178_v9, %v158_v8 }
 0x2af   :  { %183 = vst.msk [vmem:[#allocation3 + $0x8] sm:$0xff] %vm24_vm1, %v180_v10 }
 0x2b0   :  { %v203_v12 = vpop.xlane.xlu1 %202 }
 0x2b1   :  { %v205_v13 = vadd.f32 %v203_v12, %v189_v11 }
 0x2b2   :  { %v213_v14 = vld [vmem:[#allocation3] sm:$0xff] }
 0x2b3   :  { %349 = vlog2.f32 %v213_v14  ;;  %207 = vst.msk [vmem:[#allocation4 + $0x8] sm:$0xff] %vm24_vm1, %v205_v13 }
 0x2b6   :  { %v214_v15 = vld [vmem:[#allocation3 + $0x8] sm:$0xff] }
 0x2b7   :  { %351 = vlog2.f32 %v214_v15 }
 0x2ba   :  { %v222_v26 = vld [vmem:[#allocation4 + $0x8] sm:$0xff] }
 0x2bd   :  { %v350_v16 = vpop.eup %349 }
 0x2be   :  { %v216_v17 = vmul.f32 0.6931472, %v350_v16 }
 0x2c0   :  { %v219_v19 = vadd.f32 %v216_v17, %v211_v18 }
 0x2c1   :  { %v352_v20 = vpop.eup %351 }
 0x2c2   :  { %v223_v22 = vsub.f32 %v219_v19, %v221_v21  ;;  %v218_v23 = vmul.f32 0.6931472, %v352_v20 }
 0x2c4   :  { %225 = vst.msk [vmem:[%s513_s5] sm:$0xff] %vm24_vm1, %v223_v22  ;;  %v220_v25 = vadd.f32 %v218_v23, %v212_v24 }
 0x2c6   :  { %v224_v27 = vsub.f32 %v220_v25, %v222_v26 }
 0x2c8   :  { %226 = vst.msk [vmem:[%s513_s5 + $0x8] sm:$0xff] %vm24_vm1, %v224_v27 }
 0x2c9   :  { %375 = dma.done.wait [#allocation6], 256  }
 0x2ca   :  { %376 = vsyncadd [#allocation6], 4294967040 }
 0x2cb   :  { %246 = vsyncpa [#allocation6], 1 }

</bundles_post_ra>
